<compile_context>
chip_gen: v7x
topology: tpu7x:2x2x1
jax: 0.10.0
libtpu: 0.0.40
codegen_flags: <defaults>
</compile_context>

<pallas_src>
import jax
import jax.numpy as jnp
from jax.experimental import pallas as pl
from jax.experimental.pallas import tpu as pltpu


# exp(-x) underflows to exactly 0.0 in f32 for x >= ~104; 128 gives margin and
# also covers the masked-position weight exp(-5 - lens) when lens >= 128.
_SKIP_THRESHOLD = 128


def _supervised_attention_kernel(tmin_ref, lens_ref, ctx_ref, out_ref,
                                 acc_ref, den_ref):
    """tmin_ref: (B//TB,) i32 SMEM (per-B-tile min length, scalar prefetch),
    lens_ref: (TB, 1) f32, ctx_ref: (TB, TS, TD), out_ref: (TB, TD),
    acc_ref: (TB, TD) f32 scratch, den_ref: (TB, 1) f32 scratch."""
    b_idx = pl.program_id(0)
    s_idx = pl.program_id(2)
    n_s = pl.num_programs(2)
    TB, TS, TD = ctx_ref.shape

    @pl.when(s_idx == 0)
    def _():
        acc_ref[...] = jnp.zeros_like(acc_ref)
        den_ref[...] = jnp.zeros_like(den_ref)

    # This S tile contributes exactly 0 in f32 iff every position in it is
    # >= _SKIP_THRESHOLD and every length in the B tile is >= _SKIP_THRESHOLD
    # (then both exp(-pos) and exp(-5 - lens) underflow).  Must mirror the
    # skip condition used in the ctx index_map (which suppresses the DMA).
    live = jnp.logical_or(s_idx * TS < _SKIP_THRESHOLD,
                          tmin_ref[b_idx] < _SKIP_THRESHOLD)

    @pl.when(live)
    def _():
        lens = lens_ref[...]                                      # (TB, 1) f32

        # Global sequence positions covered by this S tile.
        pos = (jax.lax.broadcasted_iota(jnp.int32, (TB, TS), 1)
               + s_idx * TS).astype(jnp.float32)                  # (TB, TS)
        scores = jnp.where(pos < lens, lens - pos, jnp.float32(-5.0))

        # Analytic softmax shift: the max score over the full sequence is
        # exactly `lens`, so per-tile exponentials are globally consistent
        # and bounded by 1 (no overflow, no second pass).
        e = jnp.exp(scores - lens)                                # (TB, TS) f32

        den_ref[...] += jnp.sum(e, axis=-1, keepdims=True)

        # VPU path: broadcast-multiply + sublane reduction, weights kept in
        # f32 (exact; avoids the M=1 MXU GEMV + multi-pass HIGHEST penalty).
        ctx = ctx_ref[...].astype(jnp.float32)                    # (TB, TS, TD)
        acc_ref[...] += jnp.sum(ctx * e[:, :, None], axis=1)

    @pl.when(s_idx == n_s - 1)
    def _():
        inv_den = pl.reciprocal(den_ref[...], approx=False)
        out_ref[...] = (acc_ref[...] * inv_den).astype(out_ref.dtype)


def _choose_tiles(B, S, D, itemsize):
    """Pick (TB, TS, TD)."""
    # Batch tile: sublane-friendly multiple of 8, or full B.
    TB = 8 if B % 8 == 0 else B

    # Feature tile: prefer full D (contiguous per-row DMA bursts, single exp
    # sweep).  Split in two lane-dense halves only when the batch axis gives
    # no parallel grid work, so v7x's two TensorCores both get iterations.
    if B // TB == 1 and D >= 512 and D % 256 == 0:
        TD = D // 2
    else:
        TD = D

    # Sequence tile: largest divisor of S that matches the dtype's sublane
    # packing and keeps the (double-buffered) ctx block within ~8 MiB/buffer.
    sub = max(8, 32 // itemsize)              # f32: 8, bf16: 16, int8: 32
    budget = 8 * 1024 * 1024
    candidates = [t for t in range(sub, S + 1, sub) if S % t == 0]
    fitting = [t for t in candidates if TB * t * TD * itemsize <= budget]
    if fitting:
        TS = fitting[-1]
    elif candidates:
        TS = candidates[0]
    else:
        # S smaller than / not a multiple of the packing unit: a full-extent
        # block dim is always layout-valid.
        # TODO(synk): pad/mask a ragged tail for large awkwardly-sized S
        # instead of a single full-S block.
        TS = S
    return TB, TS, TD


def supervised_attention(ctx, ctx_lens):
    """ctx: (B, S, D) float array, ctx_lens: (B,) int array of lengths <= S."""
    ctx = jnp.asarray(ctx)
    ctx_lens = jnp.asarray(ctx_lens)
    B, S, D = ctx.shape
    itemsize = jnp.dtype(ctx.dtype).itemsize
    TB, TS, TD = _choose_tiles(B, S, D, itemsize)
    grid = (B // TB, D // TD, S // TS)

    # Exact for lengths < 2**24.
    lens_f = ctx_lens.astype(jnp.float32).reshape(B, 1)
    # Per-B-tile minimum length, used for the exact tile-skip test.
    tile_min = ctx_lens.astype(jnp.int32).reshape(B // TB, TB).min(axis=1)

    # First S-block index whose start position reaches the skip threshold.
    first_skippable = max(1, pl.cdiv(_SKIP_THRESHOLD, TS))

    def ctx_map(b, d, s, tmin):
        # Skipped tiles re-use the last live block index -> no new DMA issued.
        skip = jnp.logical_and(s * TS >= _SKIP_THRESHOLD,
                               tmin[b] >= _SKIP_THRESHOLD)
        return (b, jnp.where(skip, first_skippable - 1, s), d)

    return pl.pallas_call(
        _supervised_attention_kernel,
        out_shape=jax.ShapeDtypeStruct((B, D), ctx.dtype),
        grid_spec=pltpu.PrefetchScalarGridSpec(
            num_scalar_prefetch=1,
            grid=grid,
            in_specs=[
                pl.BlockSpec((TB, 1), lambda b, d, s, tmin: (b, 0)),  # lengths
                pl.BlockSpec((TB, TS, TD), ctx_map),                  # ctx
            ],
            out_specs=pl.BlockSpec((TB, TD), lambda b, d, s, tmin: (b, d)),
            scratch_shapes=[
                pltpu.VMEM((TB, TD), jnp.float32),   # numerator accumulator
                pltpu.VMEM((TB, 1), jnp.float32),    # softmax denominator
            ],
        ),
        compiler_params=pltpu.CompilerParams(
            dimension_semantics=("parallel", "parallel", "arbitrary"),
            vmem_limit_bytes=48 * 1024 * 1024,
        ),
    )(tile_min, lens_f, ctx)


def _reference(ctx, ctx_lens):
    """Pure-JAX reference mirroring the PyTorch forward."""
    B, S, D = ctx.shape
    pos = jnp.arange(S, dtype=jnp.float32)[None, :]
    lens = ctx_lens.astype(jnp.float32)[:, None]
    scores = jnp.where(pos < lens, lens - pos, -5.0)
    w = jax.nn.softmax(scores, axis=-1)
    return jnp.einsum("bs,bsd->bd", w, ctx.astype(jnp.float32),
                      precision=jax.lax.Precision.HIGHEST).astype(ctx.dtype)


if __name__ == "__main__":
    key = jax.random.PRNGKey(0)
    k1, k2, k3 = jax.random.split(key, 3)

    # 1) Small shape matching the module semantics (max(ctx_lens) == S).
    B, S, D = 2, 8, 32
    ctx = jax.random.normal(k1, (B, S, D), dtype=jnp.float32)
    ctx_lens = jnp.array([8, 5], dtype=jnp.int32)

    out = jax.block_until_ready(supervised_attention(ctx, ctx_lens))
    ref = _reference(ctx, ctx_lens)
    assert out.shape == (B, D)
    assert jnp.allclose(out, ref, atol=2e-5, rtol=2e-5), float(
        jnp.max(jnp.abs(out - ref)))

    # 2) Larger shape: exercises the split-D "parallel" axis (B//TB == 1) and
    #    the f32 accumulator path, with a mix of long and very short lengths
    #    (no tile skipping because min(lens) < threshold).
    B2, S2, D2 = 8, 1024, 512
    ctx2 = jax.random.normal(k2, (B2, S2, D2), dtype=jnp.float32)
    lens2 = jnp.array([1024, 700, 512, 3, 1, 1000, 256, 900], dtype=jnp.int32)

    out2 = jax.block_until_ready(supervised_attention(ctx2, lens2))
    ref2 = _reference(ctx2, lens2)
    assert out2.shape == (B2, D2)
    assert jnp.allclose(out2, ref2, atol=2e-5, rtol=2e-5), float(
        jnp.max(jnp.abs(out2 - ref2)))

    # 3) Long sequence with all lengths >= threshold: exercises the exact
    #    lens-aware S-tile skip (later tiles' DMA and compute are elided).
    B3, S3, D3 = 8, 2048, 256
    ctx3 = jax.random.normal(k3, (B3, S3, D3), dtype=jnp.float32)
    lens3 = jnp.array([2048, 1500, 1024, 600, 300, 2000, 130, 999],
                      dtype=jnp.int32)

    out3 = jax.block_until_ready(supervised_attention(ctx3, lens3))
    ref3 = _reference(ctx3, lens3)
    assert out3.shape == (B3, D3)
    assert jnp.allclose(out3, ref3, atol=2e-5, rtol=2e-5), float(
        jnp.max(jnp.abs(out3 - ref3)))

    print("KERNEL_OK")
</pallas_src>

<mosaic_0001>
module attributes {stable_mosaic.version = 11 : i64} {
  func.func @_supervised_attention_kernel(%arg0: i32, %arg1: i32, %arg2: i32, %arg3: memref<1xi32, #tpu.memory_space<smem>>, %arg4: memref<2x1xf32, #tpu.memory_space<vmem>>, %arg5: memref<2x8x32xf32, #tpu.memory_space<vmem>>, %arg6: memref<2x32xf32, #tpu.memory_space<vmem>>, %arg7: memref<2x32xf32, #tpu.memory_space<vmem>>, %arg8: memref<2x1xf32, #tpu.memory_space<vmem>>) attributes {dimension_semantics = [#tpu.dimension_semantics<parallel>, #tpu.dimension_semantics<parallel>, #tpu.dimension_semantics<arbitrary>], iteration_bounds = array<i64: 1, 1, 1>, scalar_prefetch = 1 : i64, scratch_operands = 2 : i64, tpu.core_type = #tpu.core_type<tc>, window_params = [{transform_indices = @transform_0, window_bounds = array<i64: 2, 1>}, {transform_indices = @transform_1, window_bounds = array<i64: 2, 8, 32>}, {transform_indices = @transform_2, window_bounds = array<i64: 2, 32>}]} {
    %c0_i32 = arith.constant 0 : i32
    %0 = arith.cmpi eq, %arg2, %c0_i32 : i32
    %1 = arith.extui %0 : i1 to i32
    %c0_i32_0 = arith.constant 0 : i32
    %2 = arith.cmpi ne, %1, %c0_i32_0 : i32
    scf.if %2 {
      %cst = arith.constant 0.000000e+00 : f32
      %14 = vector.broadcast %cst : f32 to vector<2x32xf32>
      %c0 = arith.constant 0 : index
      %c0_5 = arith.constant 0 : index
      %15 = vector.load %arg7[%c0, %c0_5] : memref<2x32xf32, #tpu.memory_space<vmem>>, vector<2x32xf32>
      tpu.vector_store %arg7[%c0, %c0_5], %14 {strides = array<i32>} : memref<2x32xf32, #tpu.memory_space<vmem>>, vector<2x32xf32>,
      %cst_6 = arith.constant 0.000000e+00 : f32
      %16 = vector.broadcast %cst_6 : f32 to vector<2x1xf32>
      %c0_7 = arith.constant 0 : index
      %c0_8 = arith.constant 0 : index
      %17 = vector.load %arg8[%c0_7, %c0_8] : memref<2x1xf32, #tpu.memory_space<vmem>>, vector<2x1xf32>
      tpu.vector_store %arg8[%c0_7, %c0_8], %16 {strides = array<i32>} : memref<2x1xf32, #tpu.memory_space<vmem>>, vector<2x1xf32>,
    } else {
    }
    %c8_i32 = arith.constant 8 : i32
    %3 = arith.muli %arg2, %c8_i32 : i32
    %c128_i32 = arith.constant 128 : i32
    %4 = arith.cmpi slt, %3, %c128_i32 : i32
    %5 = arith.index_cast %arg0 : i32 to index
    %6 = memref.load %arg3[%5] : memref<1xi32, #tpu.memory_space<smem>>
    %c128_i32_1 = arith.constant 128 : i32
    %7 = arith.cmpi slt, %6, %c128_i32_1 : i32
    %8 = arith.ori %4, %7 : i1
    %9 = arith.extui %8 : i1 to i32
    %c0_i32_2 = arith.constant 0 : i32
    %10 = arith.cmpi ne, %9, %c0_i32_2 : i32
    scf.if %10 {
      %c0 = arith.constant 0 : index
      %c0_5 = arith.constant 0 : index
      %14 = vector.load %arg4[%c0, %c0_5] : memref<2x1xf32, #tpu.memory_space<vmem>>, vector<2x1xf32>
      %15 = tpu.iota {dimensions = array<i32: 1>} : vector<2x8xi32>
      %c8_i32_6 = arith.constant 8 : i32
      %16 = arith.muli %arg2, %c8_i32_6 : i32
      %17 = vector.broadcast %16 : i32 to vector<2x8xi32>
      %18 = arith.addi %15, %17 : vector<2x8xi32>
      %19 = arith.sitofp %18 : vector<2x8xi32> to vector<2x8xf32>
      %20 = vector.broadcast %14 : vector<2x1xf32> to vector<2x8xf32>
      %21 = arith.cmpf olt, %19, %20 : vector<2x8xf32>
      %22 = vector.broadcast %14 : vector<2x1xf32> to vector<2x8xf32>
      %23 = arith.subf %22, %19 : vector<2x8xf32>
      %cst = arith.constant -5.000000e+00 : f32
      %24 = vector.broadcast %cst : f32 to vector<2x8xf32>
      %25 = arith.select %21, %23, %24 : vector<2x8xi1>, vector<2x8xf32>
      %26 = vector.broadcast %14 : vector<2x1xf32> to vector<2x8xf32>
      %27 = arith.subf %25, %26 : vector<2x8xf32>
      %28 = math.exp %27 : vector<2x8xf32>
      %c0_7 = arith.constant 0 : index
      %c0_8 = arith.constant 0 : index
      %29 = vector.load %arg8[%c0_7, %c0_8] : memref<2x1xf32, #tpu.memory_space<vmem>>, vector<2x1xf32>
      %cst_9 = arith.constant dense<0.000000e+00> : vector<2xf32>
      %30 = vector.multi_reduction <add>, %28, %cst_9 [1] : vector<2x8xf32> to vector<2xf32>
      %31 = vector.shape_cast %30 : vector<2xf32> to vector<2x1xf32>
      %32 = arith.addf %29, %31 : vector<2x1xf32>
      %c0_10 = arith.constant 0 : index
      %c0_11 = arith.constant 0 : index
      %33 = vector.load %arg8[%c0_10, %c0_11] : memref<2x1xf32, #tpu.memory_space<vmem>>, vector<2x1xf32>
      tpu.vector_store %arg8[%c0_10, %c0_11], %32 {strides = array<i32>} : memref<2x1xf32, #tpu.memory_space<vmem>>, vector<2x1xf32>,
      %c0_12 = arith.constant 0 : index
      %c0_13 = arith.constant 0 : index
      %c0_14 = arith.constant 0 : index
      %34 = vector.load %arg5[%c0_12, %c0_13, %c0_14] : memref<2x8x32xf32, #tpu.memory_space<vmem>>, vector<2x8x32xf32>
      %c0_15 = arith.constant 0 : index
      %c0_16 = arith.constant 0 : index
      %35 = vector.load %arg7[%c0_15, %c0_16] : memref<2x32xf32, #tpu.memory_space<vmem>>, vector<2x32xf32>
      %36 = vector.shape_cast %28 : vector<2x8xf32> to vector<2x8x1xf32>
      %37 = vector.broadcast %36 : vector<2x8x1xf32> to vector<2x8x32xf32>
      %38 = arith.mulf %34, %37 : vector<2x8x32xf32>
      %cst_17 = arith.constant dense<0.000000e+00> : vector<2x32xf32>
      %39 = vector.multi_reduction <add>, %38, %cst_17 [1] : vector<2x8x32xf32> to vector<2x32xf32>
      %40 = arith.addf %35, %39 : vector<2x32xf32>
      %c0_18 = arith.constant 0 : index
      %c0_19 = arith.constant 0 : index
      %41 = vector.load %arg7[%c0_18, %c0_19] : memref<2x32xf32, #tpu.memory_space<vmem>>, vector<2x32xf32>
      tpu.vector_store %arg7[%c0_18, %c0_19], %40 {strides = array<i32>} : memref<2x32xf32, #tpu.memory_space<vmem>>, vector<2x32xf32>,
    } else {
    }
    %c0_i32_3 = arith.constant 0 : i32
    %11 = arith.cmpi eq, %arg2, %c0_i32_3 : i32
    %12 = arith.extui %11 : i1 to i32
    %c0_i32_4 = arith.constant 0 : i32
    %13 = arith.cmpi ne, %12, %c0_i32_4 : i32
    scf.if %13 {
      %c0 = arith.constant 0 : index
      %c0_5 = arith.constant 0 : index
      %14 = vector.load %arg8[%c0, %c0_5] : memref<2x1xf32, #tpu.memory_space<vmem>>, vector<2x1xf32>
      %15 = tpu.reciprocal %14 : vector<2x1xf32> -> vector<2x1xf32>
      %c0_6 = arith.constant 0 : index
      %c0_7 = arith.constant 0 : index
      %16 = vector.load %arg7[%c0_6, %c0_7] : memref<2x32xf32, #tpu.memory_space<vmem>>, vector<2x32xf32>
      %17 = vector.broadcast %15 : vector<2x1xf32> to vector<2x32xf32>
      %18 = arith.mulf %16, %17 : vector<2x32xf32>
      %c0_8 = arith.constant 0 : index
      %c0_9 = arith.constant 0 : index
      %19 = vector.load %arg6[%c0_8, %c0_9] : memref<2x32xf32, #tpu.memory_space<vmem>>, vector<2x32xf32>
      tpu.vector_store %arg6[%c0_8, %c0_9], %18 {strides = array<i32>} : memref<2x32xf32, #tpu.memory_space<vmem>>, vector<2x32xf32>,
    } else {
    }
    return
  }
  func.func @transform_0(%arg0: i32, %arg1: i32, %arg2: i32, %arg3: memref<1xi32, #tpu.memory_space<smem>>) -> (i32, i32) {
    %c0_i32 = arith.constant 0 : i32
    %c0_i32_0 = arith.constant 0 : i32
    return %arg0, %c0_i32 : i32, i32
  }
  func.func @transform_1(%arg0: i32, %arg1: i32, %arg2: i32, %arg3: memref<1xi32, #tpu.memory_space<smem>>) -> (i32, i32, i32) {
    %c8_i32 = arith.constant 8 : i32
    %0 = arith.muli %arg2, %c8_i32 : i32
    %c128_i32 = arith.constant 128 : i32
    %1 = arith.cmpi sge, %0, %c128_i32 : i32
    %2 = arith.index_cast %arg0 : i32 to index
    %3 = memref.load %arg3[%2] : memref<1xi32, #tpu.memory_space<smem>>
    %c128_i32_0 = arith.constant 128 : i32
    %4 = arith.cmpi sge, %3, %c128_i32_0 : i32
    %5 = arith.andi %1, %4 : i1
    %c15_i32 = arith.constant 15 : i32
    %6 = arith.select %5, %c15_i32, %arg2 : i32
    %c0_i32 = arith.constant 0 : i32
    return %arg0, %6, %arg1 : i32, i32, i32
  }
  func.func @transform_2(%arg0: i32, %arg1: i32, %arg2: i32, %arg3: memref<1xi32, #tpu.memory_space<smem>>) -> (i32, i32) {
    %c0_i32 = arith.constant 0 : i32
    return %arg0, %arg1 : i32, i32
  }
}

</mosaic_0001>

<bundles_post_ra>
// kernel: tpu_custom_call.1
= control target key start
LH: loop header
LB: loop body
LE: loop exit
PB: predicated region body
PF: predicated region fallthrough
CT: control target
= control target key end

     0   :  { %9 = vsyncpa [#allocation7], 0  ;;  %s276_s0 = inlined_call_operand.<no memory space> [shape: s32[1], index: 0, kind: input, shape index: {}]   ;;  %s277_s1 = inlined_call_operand.vmem [shape: f32[2,1], index: 1, kind: input, shape index: {}]   ;;  %s278_s2 = inlined_call_operand.hbm [shape: f32[2,8,32], index: 2, kind: input, shape index: {}]   ;;  %s279_s3 = inlined_call_operand.hbm [shape: f32[2,32], index: 3, kind: output, shape index: {}]  }
   0x1   :  { %10 = vsyncpa [#allocation8], 0  ;;  %s218_s12 = smov [#allocation6]   ;;  %s170_s16 = scalar_lea.hbm %s278_s2, 256 }
   0x2   :  { %s27_s13 = sshll.u32 %s218_s12, 4  ;;  %p171_p0 = scmp.ne.s32.totalorder %s278_s2, %s170_s16  ;;  %s28_s13 = int_to_ptr.vmem [resolvable:$true] %s27_s13 }
   0x3   :  { %p174_p1 = scmp.lt.u32.totalorder %s170_s16, %s278_s2 }
   0x5   :  { %p176_p2 = pnand %p174_p1, %p171_p0 }
   0x7   :  { %179 = shalt.err (!%p176_p2)
}
   0x8   :  { %s180_s20 = scalar_lea.vmem %s28_s13, 256  ;;  %p185_p4 = scmp.lt.s32.totalorder %s28_s13, %s28_s13 }
   0x9   :  { %p181_p3 = scmp.ne.s32.totalorder %s28_s13, %s180_s20  ;;  %p186_p5 = scmp.lt.s32.totalorder %s180_s20, %s180_s20 }
   0xb   :  { %p187_p6 = por %p186_p5, %p185_p4 }
   0xd   :  { %p188_p7 = pnand %p187_p6, %p181_p3 }
   0xf   :  { %191 = shalt.err (!%p188_p7)
}
  0x10   :  { %s219_s21 = smov 128   ;;  %s220_s22 = smov 8  }
  0x11   :  { %33 = dma.hbm_to_vmem [thread:$0]  %s278_s2, 256, %s28_s13, [#allocation7], %s219_s21, %s219_s21, %s220_s22  }
  0x12   :  { %214 = dma.done.wait [#allocation7], 256  }
  0x13   :  { %215 = vsyncadd [#allocation7], 4294967040  ;;  %v221_v0 = vmov 0   ;;  %v60_v1 = vld [vmem:[%s277_s1] sm:$0x3]  ;;  %v61_v2 = vlaneseq  ;;  %vm78_vm1 = vcmask 58368  }
  0x14   :  { %164 = vset.pattern.permute.xlu0 %v221_v0  ;;  %165 = vset.pattern.permute.xlu1 %v221_v0  ;;  %vm48_vm2 = vcmask 254976   ;;  %v222_v16 = vmov 0.0   ;;  %vm50_vm3 = vcmask 1024   ;;  %v85_v18 = vld [vmem:[#allocation6] sm:$0xff]  ;;  %vm104_vm4 = vcmask 261120   ;;  %v86_v21 = vld [vmem:[#allocation6 + $0x8] sm:$0xff] }
  0x15   :  { %68 = vperm.xlu0 %164, %v60_v1   ;;  %v62_v3 = vand.u32 127, %v61_v2  ;;  %v89_v10 = vshrl.u32 %v61_v2, 7  ;;  %49 = vst.msk [vmem:[#allocation2] sm:$0x3] %vm48_vm2, %v222_v16  ;;  %vm121_vm5 = vcmask 1041409   ;;  %s223_s1 = smov [#allocation9]  }
  0x16   :  { %51 = vst.msk [vmem:[#allocation3] sm:$0x3] %vm50_vm3, %v222_v16  ;;  %s147_s2 = sshll.u32 %s223_s1, 4  ;;  %s148_s2 = int_to_ptr.vmem [resolvable:$true] %s147_s2 }
  0x17   :  { %v65_v4 = vcvt.s32.f32 %v62_v3  ;;  %v90_v11 = vsub.s32 0, %v89_v10  ;;  %v97_v15 = vsub.s32 1, %v89_v10  ;;  %s192_s27 = scalar_lea.vmem %s148_s2, 32  ;;  %p197_p9 = scmp.lt.s32.totalorder %s148_s2, %s148_s2 }
  0x18   :  { %p193_p8 = scmp.ne.s32.totalorder %s148_s2, %s192_s27  ;;  %p198_p10 = scmp.lt.s32.totalorder %s192_s27, %s192_s27 }
  0x1a   :  { %p199_p11 = por %p198_p10, %p197_p9 }
  0x1c   :  { %v87_v38 = vld [vmem:[#allocation2] sm:$0x3]  ;;  %p200_p12 = pnand %p199_p11, %p193_p8 }
  0x1d   :  { %v77_v41 = vld [vmem:[#allocation3] sm:$0x3] }
  0x94   :  { %v69_v5 = vpop.permute.xlu0 %68 }
  0x95   :  { %vm71_vm0 = vcmp.lt.f32.partialorder %v65_v4, %v69_v5  ;;  %v72_v6 = vsub.f32 %v69_v5, %v65_v4 }
  0x97   :  { %v73_v7 = vsel %vm71_vm0, %v72_v6, -5.0 }
  0x98   :  { %v74_v8 = vsub.f32 %v73_v7, %v69_v5 }
  0x9a   :  { %v75_v9 = vmul.f32 1.442695, %v74_v8 }
  0x9c   :  { %166 = vpow2.f32 %v75_v9 }
  0xa6   :  { %v167_v12 = vpop.eup %166 }
  0xa7   :  { %v79_v13 = vsel %vm78_vm1, %v167_v12, 0.0  ;;  %v91_v14 = vrot.slane %v167_v12, %v90_v11  ;;  %v98_v17 = vrot.slane %v167_v12, %v97_v15 }
  0xa8   :  { %80 = vadd.xlane.f32.xlu0 %v79_v13 }
  0xa9   :  { %93 = vbcast.lane.b32.xlu1 %v91_v14, 256 }
  0xad   :  { %100 = vbcast.lane.b32.xlu1 %v98_v17, 256 }
 0x11b   :  { %v94_v19 = vpop.permute.xlu1 %93 }
 0x11c   :  { %v102_v20 = vmul.f32 %v94_v19, %v85_v18 }
 0x11e   :  { %v105_v22 = vsel %vm104_vm4, %v102_v20, 0.0 }
 0x11f   :  { %v106_v23 = vrot.slane %v105_v22, 4  ;;  %v101_v24 = vpop.permute.xlu1 %100 }
 0x120   :  { %v103_v25 = vmul.f32 %v101_v24, %v86_v21 }
 0x121   :  { %v107_v26 = vadd.f32 %v106_v23, %v105_v22 }
 0x122   :  { %v112_v27 = vsel %vm104_vm4, %v103_v25, 0.0 }
 0x123   :  { %v108_v28 = vrot.slane %v107_v26, 2  ;;  %v113_v29 = vrot.slane %v112_v27, 4 }
 0x125   :  { %v109_v30 = vadd.f32 %v108_v28, %v107_v26  ;;  %v114_v31 = vadd.f32 %v113_v29, %v112_v27 }
 0x127   :  { %v115_v32 = vrot.slane %v114_v31, 2  ;;  %v110_v33 = vrot.slane %v109_v30, 1 }
 0x129   :  { %v116_v34 = vadd.f32 %v115_v32, %v114_v31  ;;  %v111_v36 = vadd.f32 %v110_v33, %v109_v30 }
 0x12b   :  { %v117_v35 = vrot.slane %v116_v34, 1 }
 0x12d   :  { %v118_v37 = vadd.f32 %v117_v35, %v116_v34 }
 0x12f   :  { %v122_v39 = vsel %vm121_vm5, %v118_v37, %v111_v36 }
 0x130   :  { %v124_v40 = vadd.f32 %v122_v39, %v87_v38 }
 0x132   :  { %126 = vst.msk [vmem:[#allocation2] sm:$0x3] %vm48_vm2, %v124_v40 }
 0x135   :  { %v81_v42 = vpop.xlane.xlu0 %80 }
 0x136   :  { %v82_v43 = vadd.f32 %v81_v42, %v77_v41 }
 0x138   :  { %84 = vst.msk [vmem:[#allocation3] sm:$0x3] %vm50_vm3, %v82_v43 }
 0x139   :  { %v132_v47 = vld [vmem:[#allocation2] sm:$0x3] }
 0x13f   :  { %v130_v44 = vld [vmem:[#allocation3] sm:$0x3] }
 0x140   :  { %168 = vrcp.f32 %v130_v44 }
 0x14a   :  { %v169_v45 = vpop.eup %168 }
 0x14b   :  { %135 = vperm.xlu1 %165, %v169_v45  }
 0x1ca   :  { %v136_v46 = vpop.permute.xlu1 %135 }
 0x1cb   :  { %v138_v48 = vmul.f32 %v136_v46, %v132_v47 }
 0x1cd   :  { %140 = vst.msk [vmem:[#allocation9] sm:$0x3] %vm48_vm2, %v138_v48 }
 0x1ce   :  { %203 = shalt.err (!%p200_p12)
}
 0x1cf   :  { %s204_s30 = scalar_lea.hbm %s279_s3, 32 }
 0x1d0   :  { %p205_p13 = scmp.ne.s32.totalorder %s279_s3, %s204_s30  ;;  %p208_p0 = scmp.lt.u32.totalorder %s204_s30, %s279_s3 }
 0x1d2   :  { %p210_p1 = pnand %p208_p0, %p205_p13 }
 0x1d4   :  { %213 = shalt.err (!%p210_p1)
}
 0x1d5   :  { %150 = dma.vmem_to_hbm [thread:$0]  %s148_s2, 32, %s279_s3, [#allocation8]  }
 0x1d6   :  { %216 = dma.done.wait [#allocation8], 32  }
 0x1d7   :  { %217 = vsyncadd [#allocation8], 4294967264 }
 0x1d8   :  { %154 = vsyncpa [#allocation7], 1 }
 0x1d9   :  { %155 = vsyncpa [#allocation8], 1 }

</bundles_post_ra>
